<compile_context>
chip_gen: v6e
topology: v6e:2x2x1
jax: 0.10.0
libtpu: 0.0.40
codegen_flags: <defaults>
</compile_context>

<pallas_src>
import functools

import jax
import jax.numpy as jnp
from jax import lax
from jax.experimental import pallas as pl
from jax.experimental.pallas import tpu as pltpu


def _round_up(x, m):
    return ((x + m - 1) // m) * m


def _deepemd_block_kernel(qt_ref, pc_ref, pavg_ref, pf_ref, pstat_ref, gq_ref,
                          sim_ref, w1_ref, w2_ref, *, metric, center):
    # qt_ref    : (B*P, C)      raw query rows (rows = (query, spatial)), f32
    # pc_ref    : (C, WPpad)    centered proto slab (grid-constant, VMEM-resident)
    # pavg_ref  : (C, 128)      per-proto spatial-mean columns, zero padded
    # pf_ref    : (C, WPpad)    raw proto slab
    # pstat_ref : (1, WPpad)    cosine: 1/max(||pc_col||,1e-8);  l2: ||pc_col||^2
    # gq_ref    : (B, B*P)      per-query spatial-mean pooling matrix (1/P in-group)
    qt = qt_ref[...]                                         # (BP, C) f32
    md = pc_ref.dtype                                        # MXU operand dtype
    qt_m = qt.astype(md)

    # ---- per-query spatial mean via pooling matmul (MXU, no sublane regroup) -------
    q_avg = jnp.dot(gq_ref[...].astype(md), qt_m,
                    preferred_element_type=jnp.float32)      # (B, C) f32

    # ---- get_weight_vector (raw, un-centered features) -----------------------------
    w1_ref[...] = jnp.maximum(
        jnp.dot(qt_m, pavg_ref[...], preferred_element_type=jnp.float32),
        0.0) + 0.001                                         # (BP, 128)
    w2_ref[...] = jnp.maximum(
        jnp.dot(q_avg.astype(md), pf_ref[...], preferred_element_type=jnp.float32),
        0.0) + 0.001                                         # (B, WPpad)

    # ---- normalize_feature (query side; proto side pre-centered in wrapper) --------
    qc = qt - jnp.mean(qt, axis=1, keepdims=True) if center else qt

    # ---- get_similiarity_map: one big (BP, C) x (C, WPpad) MXU matmul --------------
    dot = jnp.dot(qc.astype(md), pc_ref[...],
                  preferred_element_type=jnp.float32)        # (BP, WPpad)
    q_sq = jnp.sum(qc * qc, axis=1, keepdims=True)           # (BP, 1)  f32 VPU

    if metric == 'cosine':
        # F.cosine_similarity semantics: each norm clamped at 1e-8 before dividing.
        inv_q = lax.rsqrt(jnp.maximum(q_sq, 1e-16))          # EUP
        sim_ref[...] = dot * inv_q * pstat_ref[...]
    elif metric == 'l2':
        sim_ref[...] = 1.0 - (q_sq + pstat_ref[...] - 2.0 * dot)
    else:
        raise ValueError('Unknown metric')


def deepemd_meta_forward(support, query, *, temperature=12.5, metric='cosine',
                         norm='center', block_queries=8, mxu_dtype=jnp.float32):
    """DeepEMD.forward in mode='meta' (emd_forward_1shot) on pre-encoded features.

    support: (1, way, C, H, W)   query: (nq, C, H, W)   (PyTorch NCHW)
    Returns (logits, weight_1, weight_2, similarity_map).
    """
    proto = support[0].astype(jnp.float32)       # proto.squeeze(0) -> (way, C, H, W)
    way, C, H, W = proto.shape
    nq = query.shape[0]
    P = H * W
    WP = way * P
    WPpad = _round_up(WP, 128)
    WAYPAD = 128
    assert way <= WAYPAD, "way must be <= 128"

    B = block_queries
    assert B % 8 == 0, "block_queries must be a multiple of 8 (sublane tiling)"
    nq_pad = _round_up(nq, B)
    ngrid = nq_pad // B
    BP = B * P
    center = (norm == 'center')

    # ---- layout plumbing for query: rows = (query, spatial), cols = channels -------
    qt = jnp.transpose(query.astype(jnp.float32).reshape(nq, C, P),
                       (0, 2, 1)).reshape(nq * P, C)
    if nq_pad != nq:
        qt = jnp.pad(qt, ((0, (nq_pad - nq) * P), (0, 0)))

    # ---- grid-constant proto-side prep, hoisted out of the kernel ------------------
    pf3 = proto.reshape(way, C, P)
    pf = jnp.transpose(pf3, (1, 0, 2)).reshape(C, WP)            # (C, WP) raw
    p_avg = jnp.transpose(jnp.mean(pf3, axis=-1), (1, 0))        # (C, way)
    pc = pf - jnp.mean(pf, axis=0, keepdims=True) if center else pf
    p_sq = jnp.sum(pc * pc, axis=0, keepdims=True)               # (1, WP)
    if metric == 'cosine':
        pstat = lax.rsqrt(jnp.maximum(p_sq, 1e-16))              # 1/max(||.||,1e-8)
    elif metric == 'l2':
        pstat = p_sq
    else:
        raise ValueError('Unknown metric')

    # zero-pad to lane-dense widths (padding columns produce exactly-zero / sliced
    # values: relu(0)+0.001 for weights, 0 for cosine sim)
    pc_pad = jnp.pad(pc, ((0, 0), (0, WPpad - WP))).astype(mxu_dtype)
    pf_pad = jnp.pad(pf, ((0, 0), (0, WPpad - WP))).astype(mxu_dtype)
    pavg_pad = jnp.pad(p_avg, ((0, 0), (0, WAYPAD - way))).astype(mxu_dtype)
    pstat_pad = jnp.pad(pstat, ((0, 0), (0, WPpad - WP)))        # f32
    # per-query spatial-mean pooling matrix: gq[b, b*P + j] = 1/P
    gq = jnp.repeat(jnp.eye(B, dtype=jnp.float32), P, axis=1) / float(P)   # (B, BP)

    kernel = functools.partial(_deepemd_block_kernel, metric=metric, center=center)

    out_shapes = (
        jax.ShapeDtypeStruct((nq_pad * P, WPpad), jnp.float32),   # sim
        jax.ShapeDtypeStruct((nq_pad * P, WAYPAD), jnp.float32),  # w1
        jax.ShapeDtypeStruct((nq_pad, WPpad), jnp.float32),       # w2
    )

    grid_spec = pl.GridSpec(
        grid=(ngrid,),
        in_specs=[
            pl.BlockSpec((BP, C), lambda i: (i, 0)),        # B queries (DMA'd per step)
            pl.BlockSpec((C, WPpad), lambda i: (0, 0)),     # centered protos (resident)
            pl.BlockSpec((C, WAYPAD), lambda i: (0, 0)),    # proto means (resident)
            pl.BlockSpec((C, WPpad), lambda i: (0, 0)),     # raw protos (resident)
            pl.BlockSpec((1, WPpad), lambda i: (0, 0)),     # proto norm stats (resident)
            pl.BlockSpec((B, BP), lambda i: (0, 0)),        # pooling matrix (resident)
        ],
        out_specs=[
            pl.BlockSpec((BP, WPpad), lambda i: (i, 0)),
            pl.BlockSpec((BP, WAYPAD), lambda i: (i, 0)),
            pl.BlockSpec((B, WPpad), lambda i: (i, 0)),
        ],
    )

    simo, w1o, w2o = pl.pallas_call(
        kernel,
        out_shape=out_shapes,
        grid_spec=grid_spec,
        compiler_params=pltpu.CompilerParams(
            dimension_semantics=("parallel",)),
    )(qt, pc_pad, pavg_pad, pf_pad, pstat_pad, gq)

    # ---- slice off padding and reshape back to the PyTorch layouts (plumbing) ------
    sim = jnp.transpose(simo[:nq * P, :WP].reshape(nq, P, way, P),
                        (0, 2, 1, 3))                              # (nq, way, P, P)
    weight_1 = jnp.transpose(w1o[:nq * P, :way].reshape(nq, P, way),
                             (0, 2, 1))                            # (nq, way, P)
    weight_2 = jnp.transpose(w2o[:nq, :WP].reshape(nq, way, P),
                             (1, 0, 2))                            # (way, nq, P)

    num_node = P   # weight_1.shape[-1]
    # TODO(synk): EMD transport flow (emd_inference_opencv / qpth) not translatable;
    # flow := ones, so logits are the uniform-flow approximation.
    logits = jnp.sum(sim, axis=(-1, -2)) * (temperature / num_node)
    return logits, weight_1, weight_2, sim


def _reference_forward(support, query, *, temperature=12.5, metric='cosine',
                       norm='center'):
    """Pure-JAX reference mirroring the PyTorch forward (flow := ones)."""
    proto = support[0]
    way, C, H, W = proto.shape
    nq = query.shape[0]
    P = H * W
    q = query.reshape(nq, C, P).astype(jnp.float32)
    p = proto.reshape(way, C, P).astype(jnp.float32)

    p_avg = p.mean(-1)                                               # (way, C)
    q_avg = q.mean(-1)                                               # (nq, C)
    w1 = jnp.maximum(jnp.einsum('mcp,nc->mnp', q, p_avg), 0.0) + 0.001
    w2 = jnp.maximum(jnp.einsum('wcp,qc->wqp', p, q_avg), 0.0) + 0.001

    if norm == 'center':
        q = q - q.mean(1, keepdims=True)
        p = p - p.mean(1, keepdims=True)

    dot = jnp.einsum('mci,ncj->mnij', q, p)
    qn = jnp.sqrt((q * q).sum(1))                                    # (nq, P)
    pn = jnp.sqrt((p * p).sum(1))                                    # (way, P)
    if metric == 'cosine':
        denom = (jnp.maximum(qn, 1e-8)[:, None, :, None] *
                 jnp.maximum(pn, 1e-8)[None, :, None, :])
        sim = dot / denom
    else:
        sim = 1.0 - (qn[:, None, :, None] ** 2 + pn[None, :, None, :] ** 2 - 2.0 * dot)
    logits = sim.sum((-1, -2)) * (temperature / P)
    return logits, w1, w2, sim


if __name__ == "__main__":
    key = jax.random.PRNGKey(0)
    k1, k2 = jax.random.split(key)

    # nq=12 with block_queries=8 exercises query padding (nq_pad=16, 2 grid steps).
    way, nq, C, H, W = 5, 12, 64, 4, 4
    support = jax.random.normal(k1, (1, way, C, H, W), dtype=jnp.float32)
    query = jax.random.normal(k2, (nq, C, H, W), dtype=jnp.float32)

    ok = True
    for metric in ('cosine', 'l2'):
        logits, w1, w2, sim = deepemd_meta_forward(
            support, query, temperature=12.5, metric=metric, norm='center')
        jax.block_until_ready((logits, w1, w2, sim))

        ref_logits, ref_w1, ref_w2, ref_sim = _reference_forward(
            support, query, temperature=12.5, metric=metric, norm='center')

        ok &= bool(jnp.allclose(w1, ref_w1, rtol=2e-3, atol=2e-3))
        ok &= bool(jnp.allclose(w2, ref_w2, rtol=2e-3, atol=2e-3))
        ok &= bool(jnp.allclose(sim, ref_sim, rtol=2e-3, atol=2e-3))
        ok &= bool(jnp.allclose(logits, ref_logits, rtol=2e-3, atol=2e-3))

    if not ok:
        raise SystemExit("mismatch vs reference")
    print("KERNEL_OK")
</pallas_src>

<mosaic_0001>
module attributes {stable_mosaic.version = 11 : i64} {
  func.func @_deepemd_block_kernel(%arg0: i32, %arg1: memref<128x64xf32, #tpu.memory_space<vmem>>, %arg2: memref<64x128xf32, #tpu.memory_space<vmem>>, %arg3: memref<64x128xf32, #tpu.memory_space<vmem>>, %arg4: memref<64x128xf32, #tpu.memory_space<vmem>>, %arg5: memref<1x128xf32, #tpu.memory_space<vmem>>, %arg6: memref<8x128xf32, #tpu.memory_space<vmem>>, %arg7: memref<128x128xf32, #tpu.memory_space<vmem>>, %arg8: memref<128x128xf32, #tpu.memory_space<vmem>>, %arg9: memref<8x128xf32, #tpu.memory_space<vmem>>) attributes {dimension_semantics = [#tpu.dimension_semantics<parallel>], iteration_bounds = array<i64: 2>, scalar_prefetch = 0 : i64, scratch_operands = 0 : i64, tpu.core_type = #tpu.core_type<tc>, window_params = [{transform_indices = @transform_0, window_bounds = array<i64: 128, 64>}, {pipeline_mode = #tpu.pipeline_mode<synchronous>, transform_indices = @transform_1, window_bounds = array<i64: 64, 128>}, {pipeline_mode = #tpu.pipeline_mode<synchronous>, transform_indices = @transform_2, window_bounds = array<i64: 64, 128>}, {pipeline_mode = #tpu.pipeline_mode<synchronous>, transform_indices = @transform_3, window_bounds = array<i64: 64, 128>}, {pipeline_mode = #tpu.pipeline_mode<synchronous>, transform_indices = @transform_4, window_bounds = array<i64: 1, 128>}, {pipeline_mode = #tpu.pipeline_mode<synchronous>, transform_indices = @transform_5, window_bounds = array<i64: 8, 128>}, {transform_indices = @transform_6, window_bounds = array<i64: 128, 128>}, {transform_indices = @transform_7, window_bounds = array<i64: 128, 128>}, {transform_indices = @transform_8, window_bounds = array<i64: 8, 128>}]} {
    %c0 = arith.constant 0 : index
    %c0_0 = arith.constant 0 : index
    %0 = vector.load %arg1[%c0, %c0_0] : memref<128x64xf32, #tpu.memory_space<vmem>>, vector<128x64xf32>
    %c0_1 = arith.constant 0 : index
    %c0_2 = arith.constant 0 : index
    %1 = vector.load %arg6[%c0_1, %c0_2] : memref<8x128xf32, #tpu.memory_space<vmem>>, vector<8x128xf32>
    %cst = arith.constant dense<0.000000e+00> : vector<8x64xf32>
    %2 = tpu.matmul %1, %0, %cst {dimension_numbers = #tpu.dot_dimension_numbers<[1], [0], [0], [1], [0, 0, 1, 1], [], []>} : vector<8x128xf32>, vector<128x64xf32>, vector<8x64xf32> -> vector<8x64xf32>
    %c0_3 = arith.constant 0 : index
    %c0_4 = arith.constant 0 : index
    %3 = vector.load %arg3[%c0_3, %c0_4] : memref<64x128xf32, #tpu.memory_space<vmem>>, vector<64x128xf32>
    %cst_5 = arith.constant dense<0.000000e+00> : vector<128x128xf32>
    %4 = tpu.matmul %0, %3, %cst_5 {dimension_numbers = #tpu.dot_dimension_numbers<[1], [0], [0], [1], [0, 0, 1, 1], [], []>} : vector<128x64xf32>, vector<64x128xf32>, vector<128x128xf32> -> vector<128x128xf32>
    %cst_6 = arith.constant 0.000000e+00 : f32
    %5 = vector.broadcast %cst_6 : f32 to vector<128x128xf32>
    %6 = arith.maximumf %4, %5 : vector<128x128xf32>
    %cst_7 = arith.constant 1.000000e-03 : f32
    %7 = vector.broadcast %cst_7 : f32 to vector<128x128xf32>
    %8 = arith.addf %6, %7 : vector<128x128xf32>
    %c0_8 = arith.constant 0 : index
    %c0_9 = arith.constant 0 : index
    %9 = vector.load %arg8[%c0_8, %c0_9] : memref<128x128xf32, #tpu.memory_space<vmem>>, vector<128x128xf32>
    tpu.vector_store %arg8[%c0_8, %c0_9], %8 {strides = array<i32>} : memref<128x128xf32, #tpu.memory_space<vmem>>, vector<128x128xf32>,
    %c0_10 = arith.constant 0 : index
    %c0_11 = arith.constant 0 : index
    %10 = vector.load %arg4[%c0_10, %c0_11] : memref<64x128xf32, #tpu.memory_space<vmem>>, vector<64x128xf32>
    %cst_12 = arith.constant dense<0.000000e+00> : vector<8x128xf32>
    %11 = tpu.matmul %2, %10, %cst_12 {dimension_numbers = #tpu.dot_dimension_numbers<[1], [0], [0], [1], [0, 0, 1, 1], [], []>} : vector<8x64xf32>, vector<64x128xf32>, vector<8x128xf32> -> vector<8x128xf32>
    %cst_13 = arith.constant 0.000000e+00 : f32
    %12 = vector.broadcast %cst_13 : f32 to vector<8x128xf32>
    %13 = arith.maximumf %11, %12 : vector<8x128xf32>
    %cst_14 = arith.constant 1.000000e-03 : f32
    %14 = vector.broadcast %cst_14 : f32 to vector<8x128xf32>
    %15 = arith.addf %13, %14 : vector<8x128xf32>
    %c0_15 = arith.constant 0 : index
    %c0_16 = arith.constant 0 : index
    %16 = vector.load %arg9[%c0_15, %c0_16] : memref<8x128xf32, #tpu.memory_space<vmem>>, vector<8x128xf32>
    tpu.vector_store %arg9[%c0_15, %c0_16], %15 {strides = array<i32>} : memref<8x128xf32, #tpu.memory_space<vmem>>, vector<8x128xf32>,
    %cst_17 = arith.constant dense<0.000000e+00> : vector<128xf32>
    %17 = vector.multi_reduction <add>, %0, %cst_17 [1] : vector<128x64xf32> to vector<128xf32>
    %18 = vector.shape_cast %17 : vector<128xf32> to vector<128x1xf32>
    %cst_18 = arith.constant 6.400000e+01 : f32
    %19 = vector.broadcast %cst_18 : f32 to vector<128x1xf32>
    %20 = arith.divf %18, %19 : vector<128x1xf32>
    %21 = vector.broadcast %20 : vector<128x1xf32> to vector<128x64xf32>
    %22 = arith.subf %0, %21 : vector<128x64xf32>
    %c0_19 = arith.constant 0 : index
    %c0_20 = arith.constant 0 : index
    %23 = vector.load %arg2[%c0_19, %c0_20] : memref<64x128xf32, #tpu.memory_space<vmem>>, vector<64x128xf32>
    %cst_21 = arith.constant dense<0.000000e+00> : vector<128x128xf32>
    %24 = tpu.matmul %22, %23, %cst_21 {dimension_numbers = #tpu.dot_dimension_numbers<[1], [0], [0], [1], [0, 0, 1, 1], [], []>} : vector<128x64xf32>, vector<64x128xf32>, vector<128x128xf32> -> vector<128x128xf32>
    %25 = arith.mulf %22, %22 : vector<128x64xf32>
    %cst_22 = arith.constant dense<0.000000e+00> : vector<128xf32>
    %26 = vector.multi_reduction <add>, %25, %cst_22 [1] : vector<128x64xf32> to vector<128xf32>
    %27 = vector.shape_cast %26 : vector<128xf32> to vector<128x1xf32>
    %cst_23 = arith.constant 1.000000e-16 : f32
    %28 = vector.broadcast %cst_23 : f32 to vector<128x1xf32>
    %29 = arith.maximumf %27, %28 : vector<128x1xf32>
    %30 = math.rsqrt %29 : vector<128x1xf32>
    %31 = vector.broadcast %30 : vector<128x1xf32> to vector<128x128xf32>
    %32 = arith.mulf %24, %31 : vector<128x128xf32>
    %c0_24 = arith.constant 0 : index
    %c0_25 = arith.constant 0 : index
    %33 = vector.load %arg5[%c0_24, %c0_25] : memref<1x128xf32, #tpu.memory_space<vmem>>, vector<1x128xf32>
    %34 = vector.broadcast %33 : vector<1x128xf32> to vector<128x128xf32>
    %35 = arith.mulf %32, %34 : vector<128x128xf32>
    %c0_26 = arith.constant 0 : index
    %c0_27 = arith.constant 0 : index
    %36 = vector.load %arg7[%c0_26, %c0_27] : memref<128x128xf32, #tpu.memory_space<vmem>>, vector<128x128xf32>
    tpu.vector_store %arg7[%c0_26, %c0_27], %35 {strides = array<i32>} : memref<128x128xf32, #tpu.memory_space<vmem>>, vector<128x128xf32>,
    return
  }
  func.func @transform_0(%arg0: i32) -> (i32, i32) {
    %c0_i32 = arith.constant 0 : i32
    %c0_i32_0 = arith.constant 0 : i32
    return %arg0, %c0_i32 : i32, i32
  }
  func.func @transform_1(%arg0: i32) -> (i32, i32) {
    %c0_i32 = arith.constant 0 : i32
    %c0_i32_0 = arith.constant 0 : i32
    %c0_i32_1 = arith.constant 0 : i32
    return %c0_i32, %c0_i32_0 : i32, i32
  }
  func.func @transform_2(%arg0: i32) -> (i32, i32) {
    %c0_i32 = arith.constant 0 : i32
    %c0_i32_0 = arith.constant 0 : i32
    %c0_i32_1 = arith.constant 0 : i32
    return %c0_i32, %c0_i32_0 : i32, i32
  }
  func.func @transform_3(%arg0: i32) -> (i32, i32) {
    %c0_i32 = arith.constant 0 : i32
    %c0_i32_0 = arith.constant 0 : i32
    %c0_i32_1 = arith.constant 0 : i32
    return %c0_i32, %c0_i32_0 : i32, i32
  }
  func.func @transform_4(%arg0: i32) -> (i32, i32) {
    %c0_i32 = arith.constant 0 : i32
    %c0_i32_0 = arith.constant 0 : i32
    %c0_i32_1 = arith.constant 0 : i32
    return %c0_i32, %c0_i32_0 : i32, i32
  }
  func.func @transform_5(%arg0: i32) -> (i32, i32) {
    %c0_i32 = arith.constant 0 : i32
    %c0_i32_0 = arith.constant 0 : i32
    %c0_i32_1 = arith.constant 0 : i32
    return %c0_i32, %c0_i32_0 : i32, i32
  }
  func.func @transform_6(%arg0: i32) -> (i32, i32) {
    %c0_i32 = arith.constant 0 : i32
    %c0_i32_0 = arith.constant 0 : i32
    return %arg0, %c0_i32 : i32, i32
  }
  func.func @transform_7(%arg0: i32) -> (i32, i32) {
    %c0_i32 = arith.constant 0 : i32
    %c0_i32_0 = arith.constant 0 : i32
    return %arg0, %c0_i32 : i32, i32
  }
  func.func @transform_8(%arg0: i32) -> (i32, i32) {
    %c0_i32 = arith.constant 0 : i32
    %c0_i32_0 = arith.constant 0 : i32
    return %arg0, %c0_i32 : i32, i32
  }
}

</mosaic_0001>

<bundles_post_ra>
// kernel: tpu_custom_call.1
= control target key start
LH: loop header
LB: loop body
LE: loop exit
PB: predicated region body
PF: predicated region fallthrough
CT: control target
= control target key end

     0   :  { %s2448_s0 = inlined_call_operand.vmem [shape: f32[256,64], index: 0, kind: input, shape index: {}]   ;;  %s2449_s1 = inlined_call_operand.vmem [shape: f32[64,128], index: 1, kind: input, shape index: {}]   ;;  %s2450_s2 = inlined_call_operand.vmem [shape: f32[64,128], index: 2, kind: input, shape index: {}]   ;;  %s2451_s3 = inlined_call_operand.vmem [shape: f32[64,128], index: 3, kind: input, shape index: {}]   ;;  %s2452_s4 = inlined_call_operand.vmem [shape: f32[1,128], index: 4, kind: input, shape index: {}]   ;;  %s2453_s5 = inlined_call_operand.vmem [shape: f32[8,128], index: 5, kind: input, shape index: {}]   ;;  %s2454_s6 = inlined_call_operand.hbm [shape: f32[256,128], index: 6, kind: output, shape index: {0}]   ;;  %s2455_s7 = inlined_call_operand.hbm [shape: f32[256,128], index: 7, kind: output, shape index: {1}]   ;;  %s2456_s8 = inlined_call_operand.hbm [shape: f32[16,128], index: 8, kind: output, shape index: {2}]  }
   0x1   :  { %2462 = sst [smem:[#allocation9_spill]] %s2448_s0 }
   0x2   :  { %2463 = sst [smem:[#allocation10_spill]] %s2449_s1 }
   0x3   :  { %14 = vsyncpa [#allocation3], 0 }
   0x4   :  { %16 = vsyncpa [#allocation3 + $0x1], 0 }
   0x5   :  { %17 = vsyncpa [#allocation5], 0 }
   0x6   :  { %19 = vsyncpa [#allocation5 + $0x1], 0  ;;  %s1890_s27 = smov 0   ;;  %s1892_s28 = smov 0  }
   0x7   :  { %s1894_s29 = smov 0   ;;  %s1896_s30 = smov 0  }
   0x8 LB: > { %s1911_s9 = sadd.s32 4294967295, %s1836_s30   ;;  %s2457_s10 = sadd.s32 4294967294, %s1836_s30   ;;  %s1836_s30 = sphi %s1896_s30, %s2476_s30   ;;  %s1832_s29 = sphi %s1894_s29, %s2475_s29   ;;  %s1828_s28 = sphi %s1892_s28, %s2474_s28   ;;  %s1824_s27 = sphi %s1890_s27, %s2473_s27  }
   0x9   : > { %s1915_s11 = sadd.s32 1, %s1836_s30   ;;  %s163_s12 = sadd.s32 1, %s1832_s29 }
   0xa   : > { %s160_s13 = ssub.s32 %s1836_s30, %s1915_s11  ;;  %p173_p0 = scmp.ne.s32.totalorder %s1832_s29, %s1828_s28 }
   0xb   : > { %p161_p1 = scmp.eq.s32.totalorder %s160_s13, 0  ;;  %p174_p2 = scmp.eq.s32.totalorder %s1911_s9, 1 }
   0xc   : > { %p179_p3 = scmp.ne.s32.totalorder %s1828_s28, %s1824_s27  ;;  %p180_p4 = scmp.eq.s32.totalorder %s2457_s10, 1 }
   0xd   : > { %s1928_s14 = scalar_select %p161_p1, %s1832_s29, %s163_s12  }
   0xe   : > { %p1930_p5 = por %p174_p2, %p173_p0  ;;  %p1934_p6 = por %p180_p4, %p179_p3 }
   0xf   : > { %p1359_p7 = scmp.ge.s32.totalorder %s1836_s30, 1  ;;  %p274_p8 = scmp.lt.s32.totalorder %s1836_s30, 3 }
  0x11   : > { %p275_p9 = pnand %p1359_p7, %p274_p8 }
  0x12   : > { %s1363_s17 = sshll.u32 (!%p275_p9), %s1911_s9, 4  ;;  %s2466_s0 = sld [smem:[#allocation9_spill]] (!%p275_p9) }
  0x13   : > { %278 = sbr.rel (%p275_p9) target bundleno = 464 (0x1d0), region = 44  ;;  %p319_p10 = scmp.lt.s32.totalorder (!%p275_p9), %s1363_s17, 31 }
  0x14   : > { %s2467_s1 = sld [smem:[#allocation10_spill]] (!%p275_p9)  ;;  %s1185_s12 = sand.u32 (!%p275_p9), 1, %s1911_s9  }
  0x15   : > { %s2459_s13 = sshll.u32 (!%p275_p9), %s1911_s9, 11  ;;  %s2310_s21 = scalar_lea.sflag (!%p275_p9), [#allocation5], %s1185_s12 }
  0x16   : > { %s2305_s19 = scalar_lea.hbm (!%p275_p9), %s2455_s7, %s2459_s13  ;;  %s1840_s23 = smov (!%p275_p9), [#allocation4]  }
  0x17   : > { %s1724_s10 = sshll.u32 (!%p275_p9), %s1840_s23, 4  ;;  %s1725_s10 = int_to_ptr.vmem [resolvable:$false] %s1724_s10 }
  0x18   : > { %v1944_v0 = vld [vmem:[%s2450_s2 + $0x38] sm:$0xff]  ;;  %v1838_v1 = vmov 0.0   ;;  %vm1839_vm0 = vmmov 0   ;;  %v1952_v2 = vld [vmem:[%s2450_s2 + $0x30] sm:$0xff]  ;;  %s2478_s17 = smov (!%p319_p10, %s1363_s17), 31  ;;  %v1959_v3 = vld [vmem:[%s2450_s2 + $0x28] sm:$0xff] }
  0x19   : > { %1485 = vmatprep.subr.mxu0 %v1838_v1  ;;  %1517 = vmatprep.mubr.msk.f32.mxu0 %vm1839_vm0, %v1838_v1  ;;  %s1364_s24 = sshll.u32 %s2478_s17, 3  ;;  %v1966_v4 = vld [vmem:[%s2450_s2 + $0x20] sm:$0xff]  ;;  %vm421_vm1 = vcmask 523264   ;;  %v1989_v8 = vld [vmem:[%s2450_s2 + $0x18] sm:$0xff]  ;;  %v2034_v21 = vld [vmem:[%s2450_s2 + $0x10] sm:$0xff] }
  0x1a   : > { %1619 = vmatprep.subr.mxu1 %v1944_v0  ;;  %s1971_s18 = scalar_lea.vmem %s2466_s0, %s1364_s24  ;;  %v2055_v26 = vld [vmem:[%s2450_s2 + $0x8] sm:$0xff]  ;;  %v2079_v32 = vld [vmem:[%s2450_s2] sm:$0xff]  ;;  %v835_v37 = vld [vmem:[%s2467_s1 + $0x38] sm:$0xff]  ;;  %s2274_s24 = sand.u32 1, %s1828_s28  }
  0x1b   : > { %1627 = vmatpush3.msra.mxu1 %v1944_v0  ;;  %v1975_v5 = vld [vmem:[%s1971_s18 + $0x78] sm:$0xff]  ;;  %v1978_v6 = vld [vmem:[%s1971_s18 + $0x70] sm:$0xff]  ;;  %v1983_v7 = vld [vmem:[%s1971_s18] sm:$0xff]  ;;  %s2458_s25 = sshll.u32 %s2274_s24, 7 }
  0x1c   : > { %1620 = vmatprep.subr.mxu1 %v1952_v2  ;;  %1486 = vmatpush3.msra.mxu0 %v1975_v5  ;;  %v1993_v9 = vld [vmem:[%s1971_s18 + $0x68] sm:$0xff]  ;;  %v747_v10 = vsel %vm421_vm1, %v1983_v7, 0.0  ;;  %v1998_v11 = vld [vmem:[%s1971_s18 + $0x10] sm:$0xff]  ;;  %v2008_v14 = vld [vmem:[%s1971_s18 + $0x18] sm:$0xff]  ;;  %v789_v41 = vsel %vm421_vm1, %v1978_v6, 0.0  ;;  %v792_v43 = vsel %vm421_vm1, %v1975_v5, 0.0 }
  0x1d   : > { %1628 = vmatpush3.msra.mxu1 %v1952_v2  ;;  %1487 = vmatprep.subr.mxu0 %v1838_v1  ;;  %v2001_v12 = vld [vmem:[%s1971_s18 + $0x8] sm:$0xff]  ;;  %v753_v13 = vsel %vm421_vm1, %v1998_v11, 0.0  ;;  %v2012_v15 = vld [vmem:[%s1971_s18 + $0x60] sm:$0xff]  ;;  %v756_v17 = vsel %vm421_vm1, %v2008_v14, 0.0  ;;  %v2025_v19 = vld [vmem:[%s1971_s18 + $0x58] sm:$0xff]  ;;  %v786_v39 = vsel %vm421_vm1, %v1993_v9, 0.0 }
  0x1e   : > { %1621 = vmatprep.subr.mxu1 %v1959_v3  ;;  %1488 = vmatpush3.msra.mxu0 %v1978_v6  ;;  %v750_v16 = vsel %vm421_vm1, %v2001_v12, 0.0  ;;  %v2020_v18 = vld [vmem:[%s1971_s18 + $0x20] sm:$0xff]  ;;  %v2028_v20 = vld [vmem:[%s1971_s18 + $0x28] sm:$0xff]  ;;  %v2039_v22 = vld [vmem:[%s1971_s18 + $0x50] sm:$0xff]  ;;  %v780_v36 = vsel %vm421_vm1, %v2025_v19, 0.0  ;;  %v783_v38 = vsel %vm421_vm1, %v2012_v15, 0.0 }
  0x1f   : > { %1629 = vmatpush3.msra.mxu1 %v1959_v3  ;;  %748 = vadd.xlane.f32.xlu0 %v747_v10  ;;  %v759_v23 = vsel %vm421_vm1, %v2020_v18, 0.0  ;;  %v762_v24 = vsel %vm421_vm1, %v2028_v20, 0.0  ;;  %v2049_v25 = vld [vmem:[%s1971_s18 + $0x48] sm:$0xff]  ;;  %v2059_v27 = vld [vmem:[%s1971_s18 + $0x30] sm:$0xff]  ;;  %v2063_v28 = vld [vmem:[%s1971_s18 + $0x40] sm:$0xff]  ;;  %v777_v35 = vsel %vm421_vm1, %v2039_v22, 0.0 }
  0x20   : > { %1622 = vmatprep.subr.mxu1 %v1966_v4  ;;  %1489 = vmatprep.subr.mxu0 %v1838_v1  ;;  %v2066_v29 = vld [vmem:[%s1971_s18 + $0x38] sm:$0xff]  ;;  %v765_v30 = vsel %vm421_vm1, %v2059_v27, 0.0  ;;  %v771_v33 = vsel %vm421_vm1, %v2063_v28, 0.0  ;;  %v774_v34 = vsel %vm421_vm1, %v2049_v25, 0.0  ;;  %v834_v40 = vld [vmem:[%s2467_s1 + $0x30] sm:$0xff]  ;;  %v342_v42 = vld [vmem:[%s2453_s5] sm:$0xff] }
  0x21   : > { %1630 = vmatpush3.msra.mxu1 %v1966_v4  ;;  %754 = vadd.xlane.f32.xlu1 %v753_v13  ;;  %v768_v31 = vsel %vm421_vm1, %v2066_v29, 0.0  ;;  %v833_v44 = vld [vmem:[%s2467_s1 + $0x28] sm:$0xff]  ;;  %v832_v45 = vld [vmem:[%s2467_s1 + $0x20] sm:$0xff]  ;;  %v831_v46 = vld [vmem:[%s2467_s1 + $0x18] sm:$0xff]  ;;  %s2279_s26 = scalar_lea.vmem [#allocation4], %s2458_s25  ;;  %s1726_s25 = scalar_lea.vmem %s1725_s10, 4096 }
  0x22   : > { %1490 = vmatpush3.msra.mxu0 %v1993_v9  ;;  %1623 = vmatprep.subr.mxu1 %v1989_v8  ;;  %v830_v47 = vld [vmem:[%s2467_s1 + $0x10] sm:$0xff]  ;;  %v829_v48 = vld [vmem:[%s2467_s1 + $0x8] sm:$0xff]  ;;  %v828_v49 = vld [vmem:[%s2467_s1] sm:$0xff]  ;;  %s1220_s20 = sshll.u32 %s2279_s26, 4  ;;  %s2308_s20 = int_to_ptr.vmem [resolvable:$true] %s1220_s20 }
  0x23   : > { %1491 = vmatprep.subr.mxu0 %v1838_v1  ;;  %1631 = vmatpush3.msra.mxu1 %v1989_v8  ;;  %v670_v50 = vld [vmem:[%s2451_s3 + $0x38] sm:$0xff]  ;;  %v669_v51 = vld [vmem:[%s2451_s3 + $0x30] sm:$0xff]  ;;  %v668_v52 = vld [vmem:[%s2451_s3 + $0x28] sm:$0xff]  ;;  %s1720_s22 = scalar_lea.vmem %s2308_s20, 2048  ;;  %p1727_p0 = scmp.lt.s32.totalorder %s2308_s20, %s1725_s10 }
  0x24   : > { %1492 = vmatpush3.msra.mxu0 %v2012_v15  ;;  %751 = vadd.xlane.f32.xlu0 %v750_v16  ;;  %v667_v53 = vld [vmem:[%s2451_s3 + $0x20] sm:$0xff]  ;;  %v666_v54 = vld [vmem:[%s2451_s3 + $0x18] sm:$0xff]  ;;  %v665_v55 = vld [vmem:[%s2451_s3 + $0x10] sm:$0xff]  ;;  %p1721_p11 = scmp.ne.s32.totalorder %s2308_s20, %s1720_s22  ;;  %p1728_p1 = scmp.lt.s32.totalorder %s1726_s25, %s1720_s22 }
  0x25   : > { %1493 = vmatprep.subr.mxu0 %v1838_v1  ;;  %757 = vadd.xlane.f32.xlu1 %v756_v17  ;;  %v664_v56 = vld [vmem:[%s2451_s3 + $0x8] sm:$0xff]  ;;  %v663_v57 = vld [vmem:[%s2451_s3] sm:$0xff] }
  0x26   : > { %1494 = vmatpush3.msra.mxu0 %v2025_v19  ;;  %1624 = vmatprep.subr.mxu1 %v2034_v21  ;;  %p1722_p12 = pnand %p1721_p11, %p1930_p5  ;;  %p1729_p2 = por %p1728_p1, %p1727_p0 }
  0x27   : > { %1495 = vmatprep.subr.mxu0 %v1838_v1  ;;  %1632 = vmatpush3.msra.mxu1 %v2034_v21 }
  0x28   : > { %1496 = vmatpush3.msra.mxu0 %v2039_v22  ;;  %760 = vadd.xlane.f32.xlu0 %v759_v23  ;;  %p1723_p13 = pneg %p1722_p12 }
  0x29   : > { %1497 = vmatprep.subr.mxu0 %v1838_v1  ;;  %763 = vadd.xlane.f32.xlu1 %v762_v24 }
  0x2a   : > { %1498 = vmatpush3.msra.mxu0 %v2049_v25  ;;  %1625 = vmatprep.subr.mxu1 %v2055_v26  ;;  %p1730_p3 = pnand %p1729_p2, %p1723_p13 }
  0x2b   : > { %1499 = vmatprep.subr.mxu0 %v1838_v1  ;;  %1633 = vmatpush3.msra.mxu1 %v2055_v26 }
  0x2c   : > { %1500 = vmatpush3.msra.mxu0 %v2063_v28  ;;  %766 = vadd.xlane.f32.xlu0 %v765_v30 }
  0x2d   : > { %1501 = vmatprep.subr.mxu0 %v1838_v1  ;;  %769 = vadd.xlane.f32.xlu1 %v768_v31 }
  0x2e   : > { %1502 = vmatpush3.msra.mxu0 %v2066_v29  ;;  %1626 = vmatprep.subr.mxu1 %v2079_v32 }
  0x2f   : > { %1503 = vmatprep.subr.mxu0 %v1838_v1  ;;  %1634 = vmatpush3.msra.mxu1 %v2079_v32 }
  0x30   : > { %1504 = vmatpush3.msra.mxu0 %v2059_v27  ;;  %772 = vadd.xlane.f32.xlu0 %v771_v33 }
  0x31   : > { %1505 = vmatprep.subr.mxu0 %v1838_v1  ;;  %775 = vadd.xlane.f32.xlu1 %v774_v34 }
  0x32   : > { %1506 = vmatpush3.msra.mxu0 %v2028_v20  ;;  %1548 = vmatprep.mubr.msk.f32.mxu1 %vm421_vm1, %v2063_v28 }
  0x33   : > { %1507 = vmatprep.subr.mxu0 %v1838_v1  ;;  %1549 = vmatmul.mubr.msk.f32.vlgmr.msra.gmra.mxu1 %vm421_vm1, %v2049_v25 }
  0x34   : > { %1508 = vmatpush3.msra.mxu0 %v2020_v18  ;;  %778 = vadd.xlane.f32.xlu0 %v777_v35 }
  0x35   : > { %1509 = vmatprep.subr.mxu0 %v1838_v1  ;;  %781 = vadd.xlane.f32.xlu1 %v780_v36 }
  0x36   : > { %1510 = vmatpush3.msra.mxu0 %v2008_v14  ;;  %1579 = vmatprep.subr.mxu1 %v835_v37 }
  0x37   : > { %1511 = vmatprep.subr.mxu0 %v1838_v1  ;;  %1580 = vmatpush3.msra.mxu1 %v835_v37 }
  0x38   : > { %1512 = vmatpush3.msra.mxu0 %v1998_v11  ;;  %784 = vadd.xlane.f32.xlu0 %v783_v38 }
  0x39   : > { %1513 = vmatprep.subr.mxu0 %v1838_v1  ;;  %787 = vadd.xlane.f32.xlu1 %v786_v39 }
  0x3a   : > { %1514 = vmatpush3.msra.mxu0 %v2001_v12  ;;  %1581 = vmatprep.subr.mxu1 %v834_v40 }
  0x3b   : > { %1515 = vmatprep.subr.mxu0 %v1838_v1  ;;  %1551 = vmatprep.mubr.msk.f32.mxu1 %vm421_vm1, %v2039_v22 }
  0x3c   : > { %1516 = vmatpush3.msra.mxu0 %v1983_v7  ;;  %790 = vadd.xlane.f32.xlu0 %v789_v41 }
  0x3d   : > { %1518 = vmatmul.mubr.f32.vlgmr.msra.gmra.mxu0 %v342_v42  ;;  %793 = vadd.xlane.f32.xlu1 %v792_v43 }
  0x3e   : > { %1582 = vmatpush3.msra.mxu1 %v834_v40  ;;  %1520 = vmatprep.subr.mxu0 %v1944_v0 }
  0x3f   : > { %1552 = vmatmul.mubr.msk.f32.gmra.mxu1 %vm421_vm1, %v2025_v19  ;;  %1583 = vmatprep.subr.mxu1 %v833_v44 }
  0x40   : > { %1584 = vmatpush3.msra.mxu1 %v833_v44  ;;  %1554 = vmatprep.mubr.msk.f32.mxu1 %vm421_vm1, %v2012_v15 }
  0x41   : > { %1585 = vmatprep.subr.mxu1 %v832_v45  ;;  %1521 = vmatpush3.msra.mxu0 %v1944_v0 }
  0x42   : > { %1586 = vmatpush3.msra.mxu1 %v832_v45  ;;  %1522 = vmatprep.subr.mxu0 %v1952_v2 }
  0x43   : > { %1555 = vmatmul.mubr.msk.f32.gmra.mxu1 %vm421_vm1, %v1993_v9  ;;  %1587 = vmatprep.subr.mxu1 %v831_v46 }
  0x44   : > { %1588 = vmatpush3.msra.mxu1 %v831_v46  ;;  %1557 = vmatprep.mubr.msk.f32.mxu1 %vm421_vm1, %v1978_v6 }
  0x45   : > { %1589 = vmatprep.subr.mxu1 %v830_v47  ;;  %1523 = vmatpush3.msra.mxu0 %v1952_v2 }
  0x46   : > { %1590 = vmatpush3.msra.mxu1 %v830_v47  ;;  %1524 = vmatprep.subr.mxu0 %v1959_v3 }
  0x47   : > { %1558 = vmatmul.mubr.msk.f32.gmra.mxu1 %vm421_vm1, %v1975_v5  ;;  %1591 = vmatprep.subr.mxu1 %v829_v48 }
  0x48   : > { %1592 = vmatpush3.msra.mxu1 %v829_v48  ;;  %1525 = vmatpush3.msra.mxu0 %v1959_v3 }
  0x49   : > { %1593 = vmatprep.subr.mxu1 %v828_v49  ;;  %1526 = vmatprep.subr.mxu0 %v1966_v4 }
  0x4a   : > { %1594 = vmatpush3.msra.mxu1 %v828_v49  ;;  %1527 = vmatpush3.msra.mxu0 %v1966_v4 }
  0x4b   : > { %1528 = vmatprep.subr.mxu0 %v1989_v8  ;;  %1536 = vmatprep.mubr.msk.f32.mxu0 %vm421_vm1, %v1983_v7 }
  0x4c   : > { %1529 = vmatpush3.msra.mxu0 %v1989_v8 }
  0x4d   : > { %1530 = vmatprep.subr.mxu0 %v2034_v21 }
  0x4e   : > { %1531 = vmatpush3.msra.mxu0 %v2034_v21 }
  0x4f   : > { %1532 = vmatprep.subr.mxu0 %v2055_v26 }
  0x50   : > { %1533 = vmatpush3.msra.mxu0 %v2055_v26 }
  0x51   : > { %1534 = vmatprep.subr.mxu0 %v2079_v32 }
  0x52   : > { %1535 = vmatpush3.msra.mxu0 %v2079_v32 }
  0x53   : > { %1537 = vmatmul.mubr.msk.f32.vlgmr.msra.gmra.mxu0 %vm421_vm1, %v2001_v12  ;;  %1560 = vmatprep.subr.mxu0 %v1838_v1 }
  0x54   : > { %1561 = vmatpush3.msra.mxu0 %v670_v50  ;;  %1539 = vmatprep.mubr.msk.f32.mxu0 %vm421_vm1, %v1998_v11 }
  0x55   : > { %1562 = vmatprep.subr.mxu0 %v1838_v1 }
  0x56   : > { %1563 = vmatpush3.msra.mxu0 %v669_v51 }
  0x57   : > { %1540 = vmatmul.mubr.msk.f32.gmra.mxu0 %vm421_vm1, %v2008_v14  ;;  %1564 = vmatprep.subr.mxu0 %v1838_v1 }
  0x58   : > { %1565 = vmatpush3.msra.mxu0 %v668_v52  ;;  %1542 = vmatprep.mubr.msk.f32.mxu0 %vm421_vm1, %v2020_v18 }
  0x59   : > { %1566 = vmatprep.subr.mxu0 %v1838_v1 }
  0x5a   : > { %1567 = vmatpush3.msra.mxu0 %v667_v53 }
  0x5b   : > { %1543 = vmatmul.mubr.msk.f32.gmra.mxu0 %vm421_vm1, %v2028_v20  ;;  %1568 = vmatprep.subr.mxu0 %v1838_v1 }
  0x5c   : > { %1569 = vmatpush3.msra.mxu0 %v666_v54  ;;  %1545 = vmatprep.mubr.msk.f32.mxu0 %vm421_vm1, %v2059_v27 }
  0x5d   : > { %1570 = vmatprep.subr.mxu0 %v1838_v1 }
  0x5e   : > { %1571 = vmatpush3.msra.mxu0 %v665_v55 }
  0x5f   : > { %1546 = vmatmul.mubr.msk.f32.gmra.mxu0 %vm421_vm1, %v2066_v29  ;;  %1572 = vmatprep.subr.mxu0 %v1838_v1 }
  0x60   : > { %1573 = vmatpush3.msra.mxu0 %v664_v56  ;;  %1576 = vmatprep.mubr.msk.f32.mxu0 %vm1839_vm0, %v1838_v1 }
  0x61   : > { %1574 = vmatprep.subr.mxu0 %v1838_v1 }
  0x62   : > { %1575 = vmatpush3.msra.mxu0 %v663_v57 }
  0xa8   : > { %v749_v58 = vpop.xlane.xlu0 %748 }
  0xa9   : > { %v796_v59 = vmul.f32 0.015625, %v749_v58 }
  0xaa   : > { %v755_v60 = vpop.xlane.xlu1 %754 }
  0xab   : > { %v798_v61 = vmul.f32 0.015625, %v755_v60  ;;  %v812_v62 = vsub.f32 %v1983_v7, %v796_v59 }
  0xad   : > { %v814_v63 = vsub.f32 %v1998_v11, %v798_v61  ;;  %v752_v0 = vpop.xlane.xlu0 %751  ;;  %1595 = vmatprep.mubr.msk.f32.mxu1 %vm421_vm1, %v812_v62  ;;  %v1029_v4 = vmul.f32 %v812_v62, %v812_v62 }
  0xae   : > { %v797_v2 = vmul.f32 0.015625, %v752_v0  ;;  %v758_v3 = vpop.xlane.xlu1 %757 }
  0xaf   : > { %v799_v8 = vmul.f32 0.015625, %v758_v3  ;;  %v1031_v10 = vmul.f32 %v814_v63, %v814_v63  ;;  %v1045_v1 = vsel %vm421_vm1, %v1029_v4, 0.0 }
  0xb0   : > { %v813_v13 = vsub.f32 %v2001_v12, %v797_v2  ;;  %1046 = vadd.xlane.f32.xlu0 %v1045_v1 }
  0xb1   : > { %v815_v16 = vsub.f32 %v2008_v14, %v799_v8  ;;  %v761_v17 = vpop.xlane.xlu0 %760  ;;  %v1051_v21 = vsel %vm421_vm1, %v1031_v10, 0.0 }
  0xb2   : > { %1596 = vmatmul.mubr.msk.f32.vlgmr.msra.gmra.mxu1 %vm421_vm1, %v813_v13  ;;  %v800_v7 = vmul.f32 0.015625, %v761_v17  ;;  %v764_v11 = vpop.xlane.xlu1 %763  ;;  %v1030_v23 = vmul.f32 %v813_v13, %v813_v13 }
  0xb3   : > { %1598 = vmatprep.mubr.msk.f32.mxu1 %vm421_vm1, %v814_v63  ;;  %v801_v24 = vmul.f32 0.015625, %v764_v11  ;;  %v1032_v26 = vmul.f32 %v815_v16, %v815_v16 }
  0xb4   : > { %v816_v30 = vsub.f32 %v2020_v18, %v800_v7  ;;  %v1048_v12 = vsel %vm421_vm1, %v1030_v23, 0.0  ;;  %1052 = vadd.xlane.f32.xlu0 %v1051_v21 }
  0xb5   : > { %v817_v31 = vsub.f32 %v2028_v20, %v801_v24  ;;  %v767_v14 = vpop.xlane.xlu0 %766  ;;  %1049 = vadd.xlane.f32.xlu1 %v1048_v12  ;;  %v1054_v34 = vsel %vm421_vm1, %v1032_v26, 0.0 }
  0xb6   : > { %1599 = vmatmul.mubr.msk.f32.gmra.mxu1 %vm421_vm1, %v815_v16  ;;  %v802_v32 = vmul.f32 0.015625, %v767_v14  ;;  %v770_v33 = vpop.xlane.xlu1 %769  ;;  %v1033_v35 = vmul.f32 %v816_v30, %v816_v30 }
  0xb7   : > { %v803_v36 = vmul.f32 0.015625, %v770_v33  ;;  %1601 = vmatprep.mubr.msk.f32.mxu1 %vm421_vm1, %v816_v30  ;;  %v1034_v37 = vmul.f32 %v817_v31, %v817_v31 }
  0xb8   : > { %v818_v18 = vsub.f32 %v2059_v27, %v802_v32  ;;  %v1057_v38 = vsel %vm421_vm1, %v1033_v35, 0.0 }
  0xb9   : > { %v819_v20 = vsub.f32 %v2066_v29, %v803_v36  ;;  %v773_v39 = vpop.xlane.xlu0 %772  ;;  %1055 = vadd.xlane.f32.xlu1 %v1054_v34  ;;  %1058 = vadd.xlane.f32.xlu0 %v1057_v38  ;;  %v1060_v42 = vsel %vm421_vm1, %v1034_v37, 0.0 }
  0xba   : > { %1602 = vmatmul.mubr.msk.f32.gmra.mxu1 %vm421_vm1, %v817_v31  ;;  %v804_v40 = vmul.f32 0.015625, %v773_v39  ;;  %v776_v41 = vpop.xlane.xlu1 %775  ;;  %v1035_v43 = vmul.f32 %v818_v18, %v818_v18 }
  0xbb   : > { %v805_v44 = vmul.f32 0.015625, %v776_v41  ;;  %1604 = vmatprep.mubr.msk.f32.mxu1 %vm421_vm1, %v818_v18  ;;  %v1036_v45 = vmul.f32 %v819_v20, %v819_v20 }
  0xbc   : > { %v820_v27 = vsub.f32 %v2063_v28, %v804_v40  ;;  %v1063_v46 = vsel %vm421_vm1, %v1035_v43, 0.0 }
  0xbd   : > { %v821_v29 = vsub.f32 %v2049_v25, %v805_v44  ;;  %v779_v47 = vpop.xlane.xlu0 %778  ;;  %1061 = vadd.xlane.f32.xlu1 %v1060_v42  ;;  %1064 = vadd.xlane.f32.xlu0 %v1063_v46  ;;  %v1066_v50 = vsel %vm421_vm1, %v1036_v45, 0.0 }
  0xbe   : > { %1605 = vmatmul.mubr.msk.f32.gmra.mxu1 %vm421_vm1, %v819_v20  ;;  %v806_v48 = vmul.f32 0.015625, %v779_v47  ;;  %v782_v49 = vpop.xlane.xlu1 %781  ;;  %v1037_v51 = vmul.f32 %v820_v27, %v820_v27 }
  0xbf   : > { %v807_v52 = vmul.f32 0.015625, %v782_v49  ;;  %1607 = vmatprep.mubr.msk.f32.mxu1 %vm421_vm1, %v820_v27  ;;  %v1038_v53 = vmul.f32 %v821_v29, %v821_v29 }
  0xc0   : > { %v822_v28 = vsub.f32 %v2039_v22, %v806_v48  ;;  %v1069_v54 = vsel %vm421_vm1, %v1037_v51, 0.0 }
  0xc1   : > { %v823_v25 = vsub.f32 %v2025_v19, %v807_v52  ;;  %v785_v55 = vpop.xlane.xlu0 %784  ;;  %1067 = vadd.xlane.f32.xlu1 %v1066_v50  ;;  %1070 = vadd.xlane.f32.xlu0 %v1069_v54  ;;  %v1072_v58 = vsel %vm421_vm1, %v1038_v53, 0.0 }
  0xc2   : > { %1608 = vmatmul.mubr.msk.f32.gmra.mxu1 %vm421_vm1, %v821_v29  ;;  %v808_v56 = vmul.f32 0.015625, %v785_v55  ;;  %v788_v57 = vpop.xlane.xlu1 %787  ;;  %v1039_v59 = vmul.f32 %v822_v28, %v822_v28 }
  0xc3   : > { %v809_v60 = vmul.f32 0.015625, %v788_v57  ;;  %1610 = vmatprep.mubr.msk.f32.mxu1 %vm421_vm1, %v822_v28  ;;  %v1040_v61 = vmul.f32 %v823_v25, %v823_v25 }
  0xc4   : > { %v824_v22 = vsub.f32 %v2012_v15, %v808_v56  ;;  %v1075_v62 = vsel %vm421_vm1, %v1039_v59, 0.0 }
  0xc5   : > { %v825_v19 = vsub.f32 %v1993_v9, %v809_v60  ;;  %v791_v63 = vpop.xlane.xlu0 %790  ;;  %1073 = vadd.xlane.f32.xlu1 %v1072_v58  ;;  %1076 = vadd.xlane.f32.xlu0 %v1075_v62  ;;  %v1078_v3 = vsel %vm421_vm1, %v1040_v61, 0.0 }
  0xc6   : > { %1611 = vmatmul.mubr.msk.f32.gmra.mxu1 %vm421_vm1, %v823_v25  ;;  %v810_v0 = vmul.f32 0.015625, %v791_v63  ;;  %v794_v2 = vpop.xlane.xlu1 %793  ;;  %v1041_v4 = vmul.f32 %v824_v22, %v824_v22 }
  0xc7   : > { %v811_v8 = vmul.f32 0.015625, %v794_v2  ;;  %1613 = vmatprep.mubr.msk.f32.mxu1 %vm421_vm1, %v824_v22  ;;  %v1042_v10 = vmul.f32 %v825_v19, %v825_v19 }
  0xc8   : > { %v826_v15 = vsub.f32 %v1978_v6, %v810_v0  ;;  %v1081_v13 = vsel %vm421_vm1, %v1041_v4, 0.0 }
  0xc9   : > { %v827_v9 = vsub.f32 %v1975_v5, %v811_v8  ;;  %1079 = vadd.xlane.f32.xlu1 %v1078_v3  ;;  %1082 = vadd.xlane.f32.xlu0 %v1081_v13  ;;  %v1084_v1 = vsel %vm421_vm1, %v1042_v10, 0.0 }
  0xca   : > { %1614 = vmatmul.mubr.msk.f32.gmra.mxu1 %vm421_vm1, %v825_v19  ;;  %v1043_v16 = vmul.f32 %v826_v15, %v826_v15 }
  0xcb   : > { %1616 = vmatprep.mubr.msk.f32.mxu1 %vm421_vm1, %v826_v15  ;;  %v1044_v17 = vmul.f32 %v827_v9, %v827_v9 }
  0xcc   : > { %v1087_v7 = vsel %vm421_vm1, %v1043_v16, 0.0 }
  0xcd   : > { %1085 = vadd.xlane.f32.xlu1 %v1084_v1  ;;  %1088 = vadd.xlane.f32.xlu0 %v1087_v7  ;;  %v1090_v6 = vsel %vm421_vm1, %v1044_v17, 0.0 }
  0xce   : > { %1617 = vmatmul.mubr.msk.f32.gmra.mxu1 %vm421_vm1, %v827_v9 }
  0xd1   : > { %1091 = vadd.xlane.f32.xlu1 %v1090_v6 }
  0xf3   : > { %v1550_v5 = vpop.f32.mrf.mxu1 }
  0xf4   : > { %v624_v11 = vmax.f32 %v1550_v5, 0.0 }
  0xf5   : > { %v576_v21 = vpop.f32.mrf.mxu1 }
  0xf6   : > { %v640_v23 = vadd.f32 0.001, %v624_v11  ;;  %v623_v24 = vmax.f32 %v576_v21, 0.0 }
  0xf8   : > { %656 = vst [vmem:[%s2279_s26 + $0x48] sm:$0xff] %v640_v23  ;;  %v639_v26 = vadd.f32 0.001, %v623_v24 }
  0xfa   : > { %655 = vst [vmem:[%s2279_s26 + $0x40] sm:$0xff] %v639_v26 }
  0xfd   : > { %v409_v30 = vpop.f32.mrf.mxu0 }
  0xfe   : > { %1577 = vmatmul.mubr.msk.f32.vlgmr.msra.gmra.mxu0 %vm421_vm1, %v409_v30 }
  0xff   : > { %v1519_v12 = vpop.f32.mrf.mxu0  ;;  %v1553_v31 = vpop.f32.mrf.mxu1 }
 0x100   : > { %v626_v14 = vmax.f32 %v1553_v31, 0.0 }
 0x101   : > { %v586_v32 = vpop.f32.mrf.mxu1 }
 0x102   : > { %v642_v33 = vadd.f32 0.001, %v626_v14  ;;  %v625_v34 = vmax.f32 %v586_v32, 0.0 }
 0x103   : > { %v1556_v35 = vpop.f32.mrf.mxu1 }
 0x104   : > { %658 = vst [vmem:[%s2279_s26 + $0x58] sm:$0xff] %v642_v33  ;;  %v641_v36 = vadd.f32 0.001, %v625_v34  ;;  %v628_v37 = vmax.f32 %v1556_v35, 0.0 }
 0x105   : > { %v596_v18 = vpop.f32.mrf.mxu1 }
 0x106   : > { %657 = vst [vmem:[%s2279_s26 + $0x50] sm:$0xff] %v641_v36  ;;  %v644_v38 = vadd.f32 0.001, %v628_v37  ;;  %v627_v20 = vmax.f32 %v596_v18, 0.0 }
 0x107   : > { %v1559_v39 = vpop.f32.mrf.mxu1 }
 0x108   : > { %660 = vst [vmem:[%s2279_s26 + $0x68] sm:$0xff] %v644_v38  ;;  %v643_v40 = vadd.f32 0.001, %v627_v20  ;;  %v630_v41 = vmax.f32 %v1559_v39, 0.0 }
 0x109   : > { %v606_v42 = vpop.f32.mrf.mxu1 }
 0x10a   : > { %659 = vst [vmem:[%s2279_s26 + $0x60] sm:$0xff] %v643_v40  ;;  %v646_v43 = vadd.f32 0.001, %v630_v41  ;;  %v629_v44 = vmax.f32 %v606_v42, 0.0 }
 0x10c   : > { %662 = vst [vmem:[%s2279_s26 + $0x78] sm:$0xff] %v646_v43  ;;  %v645_v45 = vadd.f32 0.001, %v629_v44 }
 0x10e   : > { %661 = vst [vmem:[%s2279_s26 + $0x70] sm:$0xff] %v645_v45 }
 0x113   : > { %v1538_v27 = vpop.f32.mrf.mxu0 }
 0x114   : > { %v616_v46 = vmax.f32 %v1538_v27, 0.0 }
 0x115   : > { %v536_v29 = vpop.f32.mrf.mxu0 }
 0x116   : > { %v632_v47 = vadd.f32 0.001, %v616_v46  ;;  %v615_v48 = vmax.f32 %v536_v29, 0.0 }
 0x117   : > { %v1541_v49 = vpop.f32.mrf.mxu0 }
 0x118   : > { %648 = vst [vmem:[%s2279_s26 + $0x8] sm:$0xff] %v632_v47  ;;  %v631_v50 = vadd.f32 0.001, %v615_v48  ;;  %v618_v51 = vmax.f32 %v1541_v49, 0.0 }
 0x119   : > { %v546_v52 = vpop.f32.mrf.mxu0 }
 0x11a   : > { %647 = vst [vmem:[%s2279_s26] sm:$0xff] %v631_v50  ;;  %v634_v53 = vadd.f32 0.001, %v618_v51  ;;  %v617_v28 = vmax.f32 %v546_v52, 0.0 }
 0x11b   : > { %v1544_v54 = vpop.f32.mrf.mxu0 }
 0x11c   : > { %650 = vst [vmem:[%s2279_s26 + $0x18] sm:$0xff] %v634_v53  ;;  %v633_v25 = vadd.f32 0.001, %v617_v28  ;;  %v620_v55 = vmax.f32 %v1544_v54, 0.0 }
 0x11d   : > { %v556_v56 = vpop.f32.mrf.mxu0 }
 0x11e   : > { %649 = vst [vmem:[%s2279_s26 + $0x10] sm:$0xff] %v633_v25  ;;  %v636_v57 = vadd.f32 0.001, %v620_v55  ;;  %v619_v58 = vmax.f32 %v556_v56, 0.0 }
 0x11f   : > { %v1547_v59 = vpop.f32.mrf.mxu0 }
 0x120   : > { %652 = vst [vmem:[%s2279_s26 + $0x28] sm:$0xff] %v636_v57  ;;  %v635_v60 = vadd.f32 0.001, %v619_v58  ;;  %v622_v61 = vmax.f32 %v1547_v59, 0.0 }
 0x121   : > { %v566_v22 = vpop.f32.mrf.mxu0 }
 0x122   : > { %651 = vst [vmem:[%s2279_s26 + $0x20] sm:$0xff] %v635_v60  ;;  %v638_v62 = vadd.f32 0.001, %v622_v61  ;;  %v621_v19 = vmax.f32 %v566_v22, 0.0 }
 0x124   : > { %654 = vst [vmem:[%s2279_s26 + $0x38] sm:$0xff] %v638_v62  ;;  %v637_v63 = vadd.f32 0.001, %v621_v19 }
 0x126   : > { %653 = vst [vmem:[%s2279_s26 + $0x30] sm:$0xff] %v637_v63 }
 0x127   : > { %1733 = shalt.err (!%p1730_p3)
}
 0x128   : > { %s1734_s26 = scalar_lea.hbm %s2305_s19, 2048  ;;  %s1738_s17 = scalar_lea.hbm %s2455_s7, 4096 }
 0x129   : > { %p1735_p4 = scmp.ne.s32.totalorder %s2305_s19, %s1734_s26  ;;  %p1739_p9 = scmp.lt.s32.totalorder %s2305_s19, %s2455_s7 }
 0x12a   : > { %p1740_p10 = scmp.lt.s32.totalorder %s1738_s17, %s1734_s26 }
 0x12b   : > { %p1736_p7 = pnand %p1735_p4, %p1930_p5 }
 0x12c   : > { %p1741_p11 = por %p1740_p10, %p1739_p9 }
 0x12d   : > { %p1737_p8 = pneg %p1736_p7 }
 0x12f   : > { %p1742_p12 = pnand %p1741_p11, %p1737_p8 }
 0x131   : > { %1745 = shalt.err (!%p1742_p12)
}
 0x132   : > { %s2460_s10 = smov 128   ;;  %s2461_s25 = smov 8   ;;  %v2339_v37 = vld [vmem:[%s2452_s4] ss:$0 sm:$0xff] }
 0x133   : > { %1636 = dma.vmem_to_hbm [thread:$0]  (%p1930_p5), %s2308_s20, 2048, %s2305_s19, %s2310_s21, %s2460_s10, %s2460_s10, %s2461_s25  }
 0x134   : > { %s2468_s20 = sshll.u32 %s2274_s24, 7  ;;  %s2469_s12 = sshll.u32 %s1911_s9, 11 }
 0x135   : > { %s2344_s22 = scalar_lea.vmem [#allocation2], %s2468_s20  ;;  %s2382_s23 = scalar_lea.hbm %s2454_s6, %s2469_s12 }
 0x136   : > { %s1204_s26 = sshll.u32 %s2344_s22, 4  ;;  %s1181_s13 = scalar_lea.sflag [#allocation3], %s2274_s24  ;;  %s2384_s26 = int_to_ptr.vmem [resolvable:$true] %s1204_s26 }
 0x137   : > { %s1746_s19 = scalar_lea.vmem %s2384_s26, 2048  ;;  %s1843_s20 = smov [#allocation2]  }
 0x138   : > { %p1747_p13 = scmp.ne.s32.totalorder %s2384_s26, %s1746_s19  ;;  %s1750_s10 = sshll.u32 %s1843_s20, 4  ;;  %s1751_s10 = int_to_ptr.vmem [resolvable:$false] %s1750_s10 }
 0x139   : > { %v1047_v2 = vpop.xlane.xlu0 %1046  ;;  %s1752_s25 = scalar_lea.vmem %s1751_s10, 4096  ;;  %p1753_p2 = scmp.lt.s32.totalorder %s2384_s26, %s1751_s10 }
 0x13a   : > { %v1093_v9 = vmax.f32 %v1047_v2, 1e-16  ;;  %p1748_p0 = pnand %p1747_p13, %p1930_p5  ;;  %p1754_p3 = scmp.lt.s32.totalorder %s1752_s25, %s1746_s19 }
 0x13c   : > { %p1749_p1 = pneg %p1748_p0  ;;  %p1755_p4 = por %p1754_p3, %p1753_p2 }
 0x13d   : > { %v1053_v4 = vpop.xlane.xlu0 %1052 }
 0x13e   : > { %v1050_v0 = vpop.xlane.xlu1 %1049  ;;  %v1095_v17 = vmax.f32 %v1053_v4, 1e-16  ;;  %p1756_p7 = pnand %p1755_p4, %p1749_p1 }
 0x13f   : > { %v1094_v15 = vmax.f32 %v1050_v0, 1e-16 }
 0x141   : > { %1688 = vrsqrt.f32 %v1094_v15 }
 0x142   : > { %v1056_v3 = vpop.xlane.xlu1 %1055  ;;  %v1059_v10 = vpop.xlane.xlu0 %1058  ;;  %1690 = vrsqrt.f32 %v1093_v9 }
 0x143   : > { %v1096_v16 = vmax.f32 %v1056_v3, 1e-16  ;;  %v1097_v11 = vmax.f32 %v1059_v10, 1e-16 }
 0x145   : > { %1692 = vrsqrt.f32 %v1096_v16 }
 0x146   : > { %v1062_v8 = vpop.xlane.xlu1 %1061  ;;  %v1065_v1 = vpop.xlane.xlu0 %1064  ;;  %1694 = vrsqrt.f32 %v1095_v17 }
 0x147   : > { %v1098_v6 = vmax.f32 %v1062_v8, 1e-16  ;;  %v1099_v24 = vmax.f32 %v1065_v1, 1e-16 }
 0x149   : > { %1696 = vrsqrt.f32 %v1098_v6 }
 0x14a   : > { %v1068_v13 = vpop.xlane.xlu1 %1067  ;;  %v1071_v5 = vpop.xlane.xlu0 %1070  ;;  %1698 = vrsqrt.f32 %v1097_v11 }
 0x14b   : > { %v1100_v21 = vmax.f32 %v1068_v13, 1e-16  ;;  %v1101_v31 = vmax.f32 %v1071_v5, 1e-16 }
 0x14d   : > { %1700 = vrsqrt.f32 %v1100_v21 }
 0x14e   : > { %v1074_v7 = vpop.xlane.xlu1 %1073  ;;  %v1077_v26 = vpop.xlane.xlu0 %1076  ;;  %1702 = vrsqrt.f32 %v1099_v24 }
 0x14f   : > { %v1102_v30 = vmax.f32 %v1074_v7, 1e-16  ;;  %v1689_v12 = vpop.eup %1688  ;;  %v1103_v40 = vmax.f32 %v1077_v26, 1e-16 }
 0x150   : > { %v1691_v14 = vpop.eup %1690 }
 0x151   : > { %1704 = vrsqrt.f32 %v1102_v30 }
 0x152   : > { %v1080_v23 = vpop.xlane.xlu1 %1079  ;;  %v1693_v36 = vpop.eup %1692  ;;  %1706 = vrsqrt.f32 %v1101_v31 }
 0x153   : > { %v1104_v35 = vmax.f32 %v1080_v23, 1e-16  ;;  %v1083_v38 = vpop.xlane.xlu0 %1082  ;;  %v1695_v41 = vpop.eup %1694 }
 0x154   : > { %v1105_v49 = vmax.f32 %v1083_v38, 1e-16 }
 0x155   : > { %1708 = vrsqrt.f32 %v1104_v35 }
 0x156   : > { %v1086_v33 = vpop.xlane.xlu1 %1085  ;;  %v1697_v27 = vpop.eup %1696  ;;  %1710 = vrsqrt.f32 %v1103_v40 }
 0x157   : > { %v1106_v45 = vmax.f32 %v1086_v33, 1e-16  ;;  %v1699_v50 = vpop.eup %1698  ;;  %v1089_v52 = vpop.xlane.xlu0 %1088 }
 0x158   : > { %v1107_v58 = vmax.f32 %v1089_v52, 1e-16 }
 0x159   : > { %1712 = vrsqrt.f32 %v1106_v45 }
 0x15a   : > { %v1092_v29 = vpop.xlane.xlu1 %1091  ;;  %v1701_v25 = vpop.eup %1700  ;;  %1714 = vrsqrt.f32 %v1105_v49 }
 0x15b   : > { %v1108_v54 = vmax.f32 %v1092_v29, 1e-16  ;;  %v1703_v59 = vpop.eup %1702 }
 0x15d   : > { %1716 = vrsqrt.f32 %v1108_v54 }
 0x15e   : > { %v1705_v62 = vpop.eup %1704  ;;  %1718 = vrsqrt.f32 %v1107_v58 }
 0x15f   : > { %v1707_v2 = vpop.eup %1706 }
 0x162   : > { %v1709_v10 = vpop.eup %1708 }
 0x163   : > { %v1711_v1 = vpop.eup %1710 }
 0x166   : > { %v1713_v6 = vpop.eup %1712 }
 0x167   : > { %v1715_v23 = vpop.eup %1714 }
 0x172   : > { %v1597_v32 = vpop.f32.mrf.mxu1 }
 0x173   : > { %v1126_v34 = vmul.f32 %v1689_v12, %v1597_v32  ;;  %v1717_v12 = vpop.eup %1716 }
 0x174   : > { %v950_v18 = vpop.f32.mrf.mxu1  ;;  %v1719_v33 = vpop.eup %1718 }
 0x175   : > { %v1149_v20 = vmul.f32 %v2339_v37, %v1126_v34  ;;  %v1125_v39 = vmul.f32 %v1691_v14, %v950_v18 }
 0x176   : > { %v1600_v42 = vpop.f32.mrf.mxu1 }
 0x177   : > { %1165 = vst [vmem:[%s2344_s22 + $0x8] sm:$0xff] %v1149_v20  ;;  %v1148_v43 = vmul.f32 %v2339_v37, %v1125_v39  ;;  %v1128_v44 = vmul.f32 %v1693_v36, %v1600_v42 }
 0x178   : > { %v960_v46 = vpop.f32.mrf.mxu1 }
 0x179   : > { %1164 = vst [vmem:[%s2344_s22] sm:$0xff] %v1148_v43  ;;  %v1151_v47 = vmul.f32 %v2339_v37, %v1128_v44  ;;  %v1127_v48 = vmul.f32 %v1695_v41, %v960_v46 }
 0x17a   : > { %v1603_v51 = vpop.f32.mrf.mxu1 }
 0x17b   : > { %1167 = vst [vmem:[%s2344_s22 + $0x18] sm:$0xff] %v1151_v47  ;;  %v1150_v53 = vmul.f32 %v2339_v37, %v1127_v48  ;;  %v1130_v28 = vmul.f32 %v1697_v27, %v1603_v51 }
 0x17c   : > { %v970_v55 = vpop.f32.mrf.mxu1 }
 0x17d   : > { %1166 = vst [vmem:[%s2344_s22 + $0x10] sm:$0xff] %v1150_v53  ;;  %v1153_v56 = vmul.f32 %v2339_v37, %v1130_v28  ;;  %v1129_v57 = vmul.f32 %v1699_v50, %v970_v55 }
 0x17e   : > { %v1606_v60 = vpop.f32.mrf.mxu1 }
 0x17f   : > { %1169 = vst [vmem:[%s2344_s22 + $0x28] sm:$0xff] %v1153_v56  ;;  %v1152_v61 = vmul.f32 %v2339_v37, %v1129_v57  ;;  %v1132_v22 = vmul.f32 %v1701_v25, %v1606_v60 }
 0x180   : > { %v980_v19 = vpop.f32.mrf.mxu1 }
 0x181   : > { %1168 = vst [vmem:[%s2344_s22 + $0x20] sm:$0xff] %v1152_v61  ;;  %v1155_v63 = vmul.f32 %v2339_v37, %v1132_v22  ;;  %v1131_v0 = vmul.f32 %v1703_v59, %v980_v19 }
 0x182   : > { %v1609_v3 = vpop.f32.mrf.mxu1 }
 0x183   : > { %1171 = vst [vmem:[%s2344_s22 + $0x38] sm:$0xff] %v1155_v63  ;;  %v1154_v4 = vmul.f32 %v2339_v37, %v1131_v0  ;;  %v1134_v8 = vmul.f32 %v1705_v62, %v1609_v3 }
 0x184   : > { %v990_v15 = vpop.f32.mrf.mxu1 }
 0x185   : > { %1170 = vst [vmem:[%s2344_s22 + $0x30] sm:$0xff] %v1154_v4  ;;  %v1157_v13 = vmul.f32 %v2339_v37, %v1134_v8  ;;  %v1133_v9 = vmul.f32 %v1707_v2, %v990_v15 }
 0x186   : > { %v1612_v16 = vpop.f32.mrf.mxu1 }
 0x187   : > { %1173 = vst [vmem:[%s2344_s22 + $0x48] sm:$0xff] %v1157_v13  ;;  %v1156_v17 = vmul.f32 %v2339_v37, %v1133_v9  ;;  %v1136_v7 = vmul.f32 %v1709_v10, %v1612_v16 }
 0x188   : > { %v1000_v5 = vpop.f32.mrf.mxu1 }
 0x189   : > { %1172 = vst [vmem:[%s2344_s22 + $0x40] sm:$0xff] %v1156_v17  ;;  %v1159_v11 = vmul.f32 %v2339_v37, %v1136_v7  ;;  %v1135_v21 = vmul.f32 %v1711_v1, %v1000_v5 }
 0x18a   : > { %v1615_v24 = vpop.f32.mrf.mxu1 }
 0x18b   : > { %1175 = vst [vmem:[%s2344_s22 + $0x58] sm:$0xff] %v1159_v11  ;;  %v1158_v26 = vmul.f32 %v2339_v37, %v1135_v21  ;;  %v1138_v30 = vmul.f32 %v1713_v6, %v1615_v24 }
 0x18c   : > { %v1010_v31 = vpop.f32.mrf.mxu1 }
 0x18d   : > { %1174 = vst [vmem:[%s2344_s22 + $0x50] sm:$0xff] %v1158_v26  ;;  %v1161_v14 = vmul.f32 %v2339_v37, %v1138_v30  ;;  %v1137_v32 = vmul.f32 %v1715_v23, %v1010_v31 }
 0x18e   : > { %v1618_v34 = vpop.f32.mrf.mxu1 }
 0x18f   : > { %1177 = vst [vmem:[%s2344_s22 + $0x68] sm:$0xff] %v1161_v14  ;;  %v1160_v35 = vmul.f32 %v2339_v37, %v1137_v32  ;;  %v1140_v36 = vmul.f32 %v1717_v12, %v1618_v34 }
 0x190   : > { %v1020_v18 = vpop.f32.mrf.mxu1 }
 0x191   : > { %1176 = vst [vmem:[%s2344_s22 + $0x60] sm:$0xff] %v1160_v35  ;;  %v1163_v38 = vmul.f32 %v2339_v37, %v1140_v36  ;;  %v1139_v20 = vmul.f32 %v1719_v33, %v1020_v18 }
 0x193   : > { %1179 = vst [vmem:[%s2344_s22 + $0x78] sm:$0xff] %v1163_v38  ;;  %v1162_v39 = vmul.f32 %v2339_v37, %v1139_v20 }
 0x195   : > { %1178 = vst [vmem:[%s2344_s22 + $0x70] sm:$0xff] %v1162_v39 }
 0x196   : > { %1759 = shalt.err (!%p1756_p7)
}
 0x197   : > { %s1760_s22 = scalar_lea.hbm %s2382_s23, 2048  ;;  %s1764_s17 = scalar_lea.hbm %s2454_s6, 4096 }
 0x198   : > { %p1761_p8 = scmp.ne.s32.totalorder %s2382_s23, %s1760_s22  ;;  %p1765_p11 = scmp.lt.s32.totalorder %s2382_s23, %s2454_s6 }
 0x199   : > { %p1766_p12 = scmp.lt.s32.totalorder %s1764_s17, %s1760_s22 }
 0x19a   : > { %p1762_p9 = pnand %p1761_p8, %p1930_p5 }
 0x19b   : > { %p1767_p13 = por %p1766_p12, %p1765_p11 }
 0x19c   : > { %p1763_p10 = pneg %p1762_p9 }
 0x19e   : > { %p1768_p0 = pnand %p1767_p13, %p1763_p10 }
 0x1a0   : > { %1771 = shalt.err (!%p1768_p0)
}
 0x1a1   : > { %s2470_s10 = smov 8   ;;  %s2471_s25 = smov 128  }
 0x1a2   : > { %1635 = dma.vmem_to_hbm [thread:$0]  (%p1930_p5), %s2384_s26, 2048, %s2382_s23, %s1181_s13, %s2471_s25, %s2471_s25, %s2470_s10  }
 0x1a3   : > { %s1362_s19 = sshll.u32 %s2274_s24, 3  ;;  %s1406_s18 = sshll.u32 %s1911_s9, 7 }
 0x1a4   : > { %s317_s12 = scalar_lea.vmem [#allocation6], %s1362_s19  ;;  %s1234_s20 = scalar_lea.hbm %s2456_s8, %s1406_s18 }
 0x1a5   : > { %s1236_s0 = sshll.u32 %s317_s12, 4  ;;  %s1844_s26 = smov [#allocation6]   ;;  %s1237_s0 = int_to_ptr.vmem [resolvable:$true] %s1236_s0 }
 0x1a6   : > { %s1772_s1 = scalar_lea.vmem %s1237_s0, 128  ;;  %s1776_s24 = sshll.u32 %s1844_s26, 4  ;;  %s1777_s24 = int_to_ptr.vmem [resolvable:$false] %s1776_s24 }
 0x1a7   : > { %p1773_p1 = scmp.ne.s32.totalorder %s1237_s0, %s1772_s1  ;;  %s1778_s23 = scalar_lea.vmem %s1777_s24, 256 }
 0x1a8   : > { %p1779_p4 = scmp.lt.s32.totalorder %s1237_s0, %s1777_s24  ;;  %p1780_p7 = scmp.lt.s32.totalorder %s1778_s23, %s1772_s1 }
 0x1a9   : > { %p1774_p2 = pnand %p1773_p1, %p1930_p5 }
 0x1aa   : > { %p1781_p8 = por %p1780_p7, %p1779_p4 }
 0x1ab   : > { %p1775_p3 = pneg %p1774_p2 }
 0x1ad   : > { %p1782_p9 = pnand %p1781_p8, %p1775_p3 }
 0x1be   : > { %v740_v37 = vpop.f32.mrf.mxu0 }
 0x1bf   : > { %v744_v40 = vmax.f32 %v740_v37, 0.0 }
 0x1c0   : > { %v1578_v41 = vpop.f32.mrf.mxu0 }
 0x1c1   : > { %v745_v42 = vadd.f32 0.001, %v744_v40 }
 0x1c3   : > { %746 = vst [vmem:[%s317_s12] sm:$0xff] %v745_v42 }
 0x1c4   : > { %1785 = shalt.err (!%p1782_p9)
}
 0x1c5   : > { %s1786_s9 = scalar_lea.hbm %s1234_s20, 128  ;;  %s1790_s25 = scalar_lea.hbm %s2456_s8, 256 }
 0x1c6   : > { %p1787_p10 = scmp.ne.s32.totalorder %s1234_s20, %s1786_s9  ;;  %p1791_p13 = scmp.lt.s32.totalorder %s1234_s20, %s2456_s8 }
 0x1c7   : > { %p1792_p0 = scmp.lt.s32.totalorder %s1790_s25, %s1786_s9 }
 0x1c8   : > { %p1788_p11 = pnand %p1787_p10, %p1930_p5 }
 0x1c9   : > { %p1793_p1 = por %p1792_p0, %p1791_p13 }
 0x1ca   : > { %p1789_p12 = pneg %p1788_p11 }
 0x1cc   : > { %p1794_p2 = pnand %p1793_p1, %p1789_p12 }
 0x1ce   : > { %1797 = shalt.err (!%p1794_p2)
}
 0x1cf   : > { %1637 = dma.vmem_to_hbm [thread:$0]  (%p1930_p5), %s1237_s0, 128, %s1234_s20, %s2310_s21  }
 0x1d0 PF: > { %p1651_p3 = scmp.ge.s32.totalorder %s1836_s30, 2  ;;  %s1248_s1 = sand.u32 1, %s1824_s27  }
 0x1d1   : > { %s1249_s18 = scalar_lea.sflag [#allocation3], %s1248_s1 }
 0x1d2   : > { %p1642_p4 = pnand %p1651_p3, %p1934_p6 }
 0x1d4   : > { %p1643_p7 = pneg %p1642_p4 }
 0x1d6   : > { %1815 = dma.done.wait (%p1643_p7), %s1249_s18, 2048  }
 0x1d7   : > { %1817 = vsyncadd (%p1643_p7), %s1249_s18, 4294965248  ;;  %s2472_s22 = sadd.s32 4294967294, %s1836_s30  }
 0x1d8   : > { %s1257_s17 = sand.u32 1, %s2472_s22  }
 0x1d9   : > { %s1258_s26 = scalar_lea.sflag [#allocation5], %s1257_s17 }
 0x1da   : > { %1819 = dma.done.wait (%p1643_p7), %s1258_s26, 2176  }
 0x1db   : > { %1821 = vsyncadd (%p1643_p7), %s1258_s26, 4294965120  ;;  %p22_p5 = scmp.ge.s32.totalorder %s1915_s11, 4   ;;  %s2473_s27 = smov %s1828_s28 }
 0x1dc   : > { %s2474_s28 = smov %s1832_s29  ;;  %s2475_s29 = smov %s1928_s14 }
 0x1dd   : > { %s2476_s30 = smov %s1915_s11  ;;  %24 = sbr.rel (!%p22_p5) target bundleno = 8 (0x8), region = 111 }
 0x1e2   :  { %1272 = vsyncpa [#allocation3], 1 }
 0x1e3   :  { %1274 = vsyncpa [#allocation3 + $0x1], 1 }
 0x1e4   :  { %1275 = vsyncpa [#allocation5], 1 }
 0x1e5   :  { %1277 = vsyncpa [#allocation5 + $0x1], 1 }

</bundles_post_ra>
